<compile_context>
chip_gen: v6e
topology: v6e:2x2x1
jax: 0.10.0
libtpu: 0.0.40
codegen_flags: <defaults>
</compile_context>

<pallas_src>
import jax
import jax.numpy as jnp
from jax.experimental import pallas as pl
from jax.experimental.pallas import tpu as pltpu


def diff_pool_kernel(x_ref, w_ref, scale_ref, shift_ref, o_ref):
    Bt, C, N = x_ref.shape
    K = w_ref.shape[0]

    x = x_ref[...]                                        # (Bt, C, N) bf16
    xf = x.astype(jnp.float32)                            # f32 for norm statistics

    # InstanceNorm2d(eps=1e-3, affine=False): per-(b, c) stats over N, one pass.
    mean = jnp.mean(xf, axis=2, keepdims=True)            # (Bt, C, 1)
    mean_sq = jnp.mean(xf * xf, axis=2, keepdims=True)    # (Bt, C, 1)
    var = jnp.maximum(mean_sq - mean * mean, 0.0)

    # InstanceNorm + folded eval-BatchNorm fused into ONE affine, then ReLU.
    a = scale_ref[...][None] * jax.lax.rsqrt(var + 1e-3)  # (Bt, C, 1)
    b = shift_ref[...][None] - mean * a                   # (Bt, C, 1)
    y = jnp.maximum(xf * a + b, 0.0).astype(jnp.bfloat16) # (Bt, C, N) bf16 for MXU

    # 1x1 conv as batched MXU matmul (bf16 operands, f32 accumulate).
    # Conv bias omitted: constant per (b, k) over N -> cancels exactly in softmax.
    # Broadcast W (Bt*K*C, tiny) instead of an un-batched einsum, which would
    # force a (K, Bt, N) -> (Bt, K, N) relayout of the much larger embed tensor.
    wb = jnp.broadcast_to(w_ref[...][None], (Bt, K, C))   # hoisted, once per step
    embed = jnp.einsum("bkc,bcn->bkn", wb, y,
                       preferred_element_type=jnp.float32)  # (Bt, K, N) f32

    # Softmax over N with the normalization deferred past the pooling matmul.
    m = jnp.max(embed, axis=2, keepdims=True)             # (Bt, K, 1)
    p = jnp.exp(embed - m).astype(jnp.bfloat16)           # unnormalized probs (Bt, K, N)

    # pooled[b, c, k] = sum_n x[b, c, n] * p[b, k, n]  (lane-vs-lane contraction,
    # no S^T transpose), emitted directly in the (B, C, K) output orientation.
    pooled = jnp.einsum("bcn,bkn->bck", x, p,
                        preferred_element_type=jnp.float32)  # (Bt, C, K) f32

    # Softmax denominator via the same MXU contraction (ones "channel") instead
    # of an XLU lane-reduction (XLU already carries mean/mean_sq/max over N).
    ones_row = jnp.ones((Bt, 1, N), dtype=p.dtype)
    denom = jnp.einsum("bcn,bkn->bck", ones_row, p,
                       preferred_element_type=jnp.float32)   # (Bt, 1, K) f32

    # Deferred softmax normalization: tiny reciprocal on the EUP slot (~free),
    # broadcast over the C sublanes of the (Bt, C, K) result.
    o_ref[...] = pooled * pl.reciprocal(denom, approx=True)


def _tpu_vmem_capacity_bytes():
    try:
        return int(pltpu.get_tpu_info().vmem_capacity_bytes)
    except Exception:
        return 64 << 20   # conservative default (v7x per-TensorCore)


def _footprint_bytes(Bt, C, N, K):
    """Rough per-grid-step VMEM footprint incl. double-buffered I/O tiles."""
    io = 2 * (Bt * C * N * 2) + 2 * (Bt * C * K * 4)       # x tile (bf16), out tile (f32)
    params = 2 * (K * C * 2 + 2 * C * 4)                   # W (bf16) + scale/shift (f32)
    interm = Bt * (C * N * (4 + 2) + K * N * (4 + 2) + C * K * 4)
    return io + params + interm


def _pick_block_b(B, C, N, K):
    """Footprint- and generation-aware batch-tile choice."""
    vmem_cap = _tpu_vmem_capacity_bytes()
    dual_tc = vmem_cap <= (64 << 20)          # v7x: 64 MiB/TC, 2 TCs; v5e/v6e: 128 MiB, 1 TC
    cap = (40 << 20) if dual_tc else (96 << 20)
    budget = min(int(vmem_cap * 0.6), cap)
    divisors = [d for d in range(1, B + 1) if B % d == 0]
    fitting = [d for d in divisors if _footprint_bytes(d, C, N, K) <= budget] or [1]
    if dual_tc:
        # Keep both TensorCores busy: prefer an even number of grid steps.
        even = [d for d in fitting if (B // d) % 2 == 0]
        if even:
            return max(even)
    # Single-TC chips: biggest tile wins (fatter DMAs, fewer per-step overheads).
    return max(fitting)


def _vmem_limit_bytes(Bt, C, N, K):
    vmem_cap = _tpu_vmem_capacity_bytes()
    cap = (48 << 20) if vmem_cap <= (64 << 20) else (100 << 20)
    est = int(_footprint_bytes(Bt, C, N, K) * 1.5) + (2 << 20)
    return max(4 << 20, min(cap, est))


def diff_pool_forward(x, w, bias, gamma, beta, rmean, rvar, *, block_b=None):
    """x: (B, C, N, 1) f32; w: (K, C); bias: (K,) [unused: exact no-op under
    softmax over N]; BN params: (C,).  Returns (B, C, K, 1) f32 (eval mode)."""
    del bias  # constant per (b, k) along the softmax axis -> cancels exactly
    B, C, N, _ = x.shape
    K = w.shape[0]

    # Halve the dominant HBM read; norm statistics are re-accumulated in f32
    # inside the kernel.
    x3 = x[..., 0].astype(jnp.bfloat16)                    # (B, C, N)

    # Fold eval-mode BatchNorm into one per-channel scale/shift.
    inv_std = jax.lax.rsqrt(rvar.astype(jnp.float32) + 1e-5)
    scale = (gamma.astype(jnp.float32) * inv_std)
    shift = (beta.astype(jnp.float32) - rmean.astype(jnp.float32) * scale)
    scale = scale.reshape(C, 1)
    shift = shift.reshape(C, 1)
    w_bf = w.astype(jnp.bfloat16)                          # (K, C)

    Bt = block_b if block_b is not None else _pick_block_b(B, C, N, K)
    assert B % Bt == 0, (B, Bt)
    grid = (B // Bt,)

    out = pl.pallas_call(
        diff_pool_kernel,
        out_shape=jax.ShapeDtypeStruct((B, C, K), jnp.float32),
        grid=grid,
        in_specs=[
            pl.BlockSpec((Bt, C, N), lambda i: (i, 0, 0)),   # x (bf16)
            pl.BlockSpec((K, C), lambda i: (0, 0)),          # conv weight (bf16)
            pl.BlockSpec((C, 1), lambda i: (0, 0)),          # folded BN scale
            pl.BlockSpec((C, 1), lambda i: (0, 0)),          # folded BN shift
        ],
        out_specs=pl.BlockSpec((Bt, C, K), lambda i: (i, 0, 0)),
        compiler_params=pltpu.CompilerParams(
            dimension_semantics=("parallel",),
            vmem_limit_bytes=_vmem_limit_bytes(Bt, C, N, K),
        ),
    )(x3, w_bf, scale, shift)

    # Kernel already emits (B, C, K); just restore the trailing unit dim.
    return out[..., None]


def diff_pool_reference(x, w, bias, gamma, beta, rmean, rvar):
    """Pure-JAX f32 reference matching the PyTorch eval-mode forward."""
    x3 = x[..., 0]                                         # (B, C, N)
    mean = jnp.mean(x3, axis=2, keepdims=True)
    var = jnp.mean((x3 - mean) ** 2, axis=2, keepdims=True)
    y = (x3 - mean) / jnp.sqrt(var + 1e-3)
    y = ((y - rmean[None, :, None]) / jnp.sqrt(rvar[None, :, None] + 1e-5)
         * gamma[None, :, None] + beta[None, :, None])
    y = jnp.maximum(y, 0.0)
    embed = jnp.einsum("kc,bcn->bkn", w, y) + bias[None, :, None]   # (B, K, N)
    s = jax.nn.softmax(embed, axis=2)
    out = jnp.einsum("bcn,bkn->bck", x3, s)
    return out[..., None]


if __name__ == "__main__":
    # Small shapes consistent with the module: x is (B, in_channel, N, 1).
    B, C, N, K = 2, 8, 16, 8   # in_channel=8, output_points=8, seq=16

    key = jax.random.PRNGKey(0)
    kx, kw, kb, kg, kbe, km, kv = jax.random.split(key, 7)

    x = jax.random.normal(kx, (B, C, N, 1), dtype=jnp.float32)

    # Deterministic synthetic parameters (no checkpoint load).
    w = jax.random.normal(kw, (K, C), dtype=jnp.float32) * 0.1          # Conv 1x1 weight (K,C,1,1)->(K,C)
    bias = jax.random.normal(kb, (K,), dtype=jnp.float32) * 0.1         # Conv bias (cancels in softmax)
    gamma = 1.0 + 0.1 * jax.random.normal(kg, (C,), dtype=jnp.float32)  # BN weight
    beta = 0.1 * jax.random.normal(kbe, (C,), dtype=jnp.float32)        # BN bias
    rmean = 0.1 * jax.random.normal(km, (C,), dtype=jnp.float32)        # BN running_mean
    rvar = 1.0 + 0.1 * jnp.abs(jax.random.normal(kv, (C,), dtype=jnp.float32))  # BN running_var

    out = diff_pool_forward(x, w, bias, gamma, beta, rmean, rvar)
    out = jax.block_until_ready(out)

    ref = diff_pool_reference(x, w, bias, gamma, beta, rmean, rvar)
    assert out.shape == (B, C, K, 1), out.shape
    err = float(jnp.max(jnp.abs(out - ref)))
    # bf16 input/matmuls (f32 accumulate) + approx reciprocal + one-pass variance
    # -> bf16-level tolerance vs the f32 reference.
    assert jnp.allclose(out, ref, atol=2e-2, rtol=2e-2), err

    print("KERNEL_OK")
</pallas_src>

<mosaic_0001>
module attributes {stable_mosaic.version = 11 : i64} {
  func.func @diff_pool_kernel(%arg0: i32, %arg1: memref<1x8x16xbf16, #tpu.memory_space<vmem>>, %arg2: memref<8x8xbf16, #tpu.memory_space<vmem>>, %arg3: memref<8x1xf32, #tpu.memory_space<vmem>>, %arg4: memref<8x1xf32, #tpu.memory_space<vmem>>, %arg5: memref<1x8x8xf32, #tpu.memory_space<vmem>>) attributes {dimension_semantics = [#tpu.dimension_semantics<parallel>], iteration_bounds = array<i64: 2>, scalar_prefetch = 0 : i64, scratch_operands = 0 : i64, tpu.core_type = #tpu.core_type<tc>, window_params = [{transform_indices = @transform_0, window_bounds = array<i64: 1, 8, 16>}, {pipeline_mode = #tpu.pipeline_mode<synchronous>, transform_indices = @transform_1, window_bounds = array<i64: 8, 8>}, {pipeline_mode = #tpu.pipeline_mode<synchronous>, transform_indices = @transform_2, window_bounds = array<i64: 8, 1>}, {pipeline_mode = #tpu.pipeline_mode<synchronous>, transform_indices = @transform_3, window_bounds = array<i64: 8, 1>}, {transform_indices = @transform_4, window_bounds = array<i64: 1, 8, 8>}]} {
    %c0 = arith.constant 0 : index
    %c0_0 = arith.constant 0 : index
    %c0_1 = arith.constant 0 : index
    %0 = vector.load %arg1[%c0, %c0_0, %c0_1] : memref<1x8x16xbf16, #tpu.memory_space<vmem>>, vector<1x8x16xbf16>
    %1 = arith.extf %0 : vector<1x8x16xbf16> to vector<1x8x16xf32>
    %cst = arith.constant dense<0.000000e+00> : vector<1x8xf32>
    %2 = vector.multi_reduction <add>, %1, %cst [2] : vector<1x8x16xf32> to vector<1x8xf32>
    %3 = vector.shape_cast %2 : vector<1x8xf32> to vector<1x8x1xf32>
    %cst_2 = arith.constant 1.600000e+01 : f32
    %4 = vector.broadcast %cst_2 : f32 to vector<1x8x1xf32>
    %5 = arith.divf %3, %4 : vector<1x8x1xf32>
    %6 = arith.mulf %1, %1 : vector<1x8x16xf32>
    %cst_3 = arith.constant dense<0.000000e+00> : vector<1x8xf32>
    %7 = vector.multi_reduction <add>, %6, %cst_3 [2] : vector<1x8x16xf32> to vector<1x8xf32>
    %8 = vector.shape_cast %7 : vector<1x8xf32> to vector<1x8x1xf32>
    %cst_4 = arith.constant 1.600000e+01 : f32
    %9 = vector.broadcast %cst_4 : f32 to vector<1x8x1xf32>
    %10 = arith.divf %8, %9 : vector<1x8x1xf32>
    %11 = arith.mulf %5, %5 : vector<1x8x1xf32>
    %12 = arith.subf %10, %11 : vector<1x8x1xf32>
    %cst_5 = arith.constant 0.000000e+00 : f32
    %13 = vector.broadcast %cst_5 : f32 to vector<1x8x1xf32>
    %14 = arith.maximumf %12, %13 : vector<1x8x1xf32>
    %c0_6 = arith.constant 0 : index
    %c0_7 = arith.constant 0 : index
    %15 = vector.load %arg3[%c0_6, %c0_7] : memref<8x1xf32, #tpu.memory_space<vmem>>, vector<8x1xf32>
    %16 = vector.shape_cast %15 : vector<8x1xf32> to vector<1x8x1xf32>
    %cst_8 = arith.constant 1.000000e-03 : f32
    %17 = vector.broadcast %cst_8 : f32 to vector<1x8x1xf32>
    %18 = arith.addf %14, %17 : vector<1x8x1xf32>
    %19 = math.rsqrt %18 : vector<1x8x1xf32>
    %20 = arith.mulf %16, %19 : vector<1x8x1xf32>
    %c0_9 = arith.constant 0 : index
    %c0_10 = arith.constant 0 : index
    %21 = vector.load %arg4[%c0_9, %c0_10] : memref<8x1xf32, #tpu.memory_space<vmem>>, vector<8x1xf32>
    %22 = vector.shape_cast %21 : vector<8x1xf32> to vector<1x8x1xf32>
    %23 = arith.mulf %5, %20 : vector<1x8x1xf32>
    %24 = arith.subf %22, %23 : vector<1x8x1xf32>
    %25 = vector.broadcast %20 : vector<1x8x1xf32> to vector<1x8x16xf32>
    %26 = arith.mulf %1, %25 : vector<1x8x16xf32>
    %27 = vector.broadcast %24 : vector<1x8x1xf32> to vector<1x8x16xf32>
    %28 = arith.addf %26, %27 : vector<1x8x16xf32>
    %cst_11 = arith.constant 0.000000e+00 : f32
    %29 = vector.broadcast %cst_11 : f32 to vector<1x8x16xf32>
    %30 = arith.maximumf %28, %29 : vector<1x8x16xf32>
    %31 = arith.truncf %30 : vector<1x8x16xf32> to vector<1x8x16xbf16>
    %c0_12 = arith.constant 0 : index
    %c0_13 = arith.constant 0 : index
    %32 = vector.load %arg2[%c0_12, %c0_13] : memref<8x8xbf16, #tpu.memory_space<vmem>>, vector<8x8xbf16>
    %33 = vector.shape_cast %32 : vector<8x8xbf16> to vector<1x8x8xbf16>
    "tpu.trace_start"() <{level = 10 : i32, message = "bkc,bcn->bkn"}> : () -> ()
    %cst_14 = arith.constant dense<0.000000e+00> : vector<1x8x16xf32>
    %34 = tpu.matmul %33, %31, %cst_14 {dimension_numbers = #tpu.dot_dimension_numbers<[2], [1], [1], [2], [0, 0, 0, 1, 1, 2], [0], [0]>} : vector<1x8x8xbf16>, vector<1x8x16xbf16>, vector<1x8x16xf32> -> vector<1x8x16xf32>
    "tpu.trace_stop"() : () -> ()
    %cst_15 = arith.constant dense<0xFF800000> : vector<1x8xf32>
    %35 = vector.multi_reduction <maximumf>, %34, %cst_15 [2] : vector<1x8x16xf32> to vector<1x8xf32>
    %36 = vector.shape_cast %35 : vector<1x8xf32> to vector<1x8x1xf32>
    %37 = vector.broadcast %36 : vector<1x8x1xf32> to vector<1x8x16xf32>
    %38 = arith.subf %34, %37 : vector<1x8x16xf32>
    %39 = math.exp %38 : vector<1x8x16xf32>
    %40 = arith.truncf %39 : vector<1x8x16xf32> to vector<1x8x16xbf16>
    "tpu.trace_start"() <{level = 10 : i32, message = "bcn,bkn->bck"}> : () -> ()
    %cst_16 = arith.constant dense<0.000000e+00> : vector<1x8x8xf32>
    %41 = tpu.matmul %0, %40, %cst_16 {dimension_numbers = #tpu.dot_dimension_numbers<[2], [2], [1], [1], [0, 0, 0, 1, 1, 1], [0], [0]>} : vector<1x8x16xbf16>, vector<1x8x16xbf16>, vector<1x8x8xf32> -> vector<1x8x8xf32>
    %cst_17 = arith.constant 1.000000e+00 : bf16
    "tpu.trace_stop"() : () -> ()
    %42 = vector.broadcast %cst_17 : bf16 to vector<1x1x16xbf16>
    "tpu.trace_start"() <{level = 10 : i32, message = "bcn,bkn->bck"}> : () -> ()
    %cst_18 = arith.constant dense<0.000000e+00> : vector<1x1x8xf32>
    %43 = tpu.matmul %42, %40, %cst_18 {dimension_numbers = #tpu.dot_dimension_numbers<[2], [2], [1], [1], [0, 0, 0, 1, 1, 1], [0], [0]>} : vector<1x1x16xbf16>, vector<1x8x16xbf16>, vector<1x1x8xf32> -> vector<1x1x8xf32>
    "tpu.trace_stop"() : () -> ()
    %44 = tpu.reciprocal %43 {approx = true} : vector<1x1x8xf32> -> vector<1x1x8xf32>
    %45 = vector.broadcast %44 : vector<1x1x8xf32> to vector<1x8x8xf32>
    %46 = arith.mulf %41, %45 : vector<1x8x8xf32>
    %c0_19 = arith.constant 0 : index
    %c0_20 = arith.constant 0 : index
    %c0_21 = arith.constant 0 : index
    %47 = vector.load %arg5[%c0_19, %c0_20, %c0_21] : memref<1x8x8xf32, #tpu.memory_space<vmem>>, vector<1x8x8xf32>
    tpu.vector_store %arg5[%c0_19, %c0_20, %c0_21], %46 {strides = array<i32>} : memref<1x8x8xf32, #tpu.memory_space<vmem>>, vector<1x8x8xf32>,
    return
  }
  func.func @transform_0(%arg0: i32) -> (i32, i32, i32) {
    %c0_i32 = arith.constant 0 : i32
    %c0_i32_0 = arith.constant 0 : i32
    %c0_i32_1 = arith.constant 0 : i32
    return %arg0, %c0_i32, %c0_i32_0 : i32, i32, i32
  }
  func.func @transform_1(%arg0: i32) -> (i32, i32) {
    %c0_i32 = arith.constant 0 : i32
    %c0_i32_0 = arith.constant 0 : i32
    %c0_i32_1 = arith.constant 0 : i32
    return %c0_i32, %c0_i32_0 : i32, i32
  }
  func.func @transform_2(%arg0: i32) -> (i32, i32) {
    %c0_i32 = arith.constant 0 : i32
    %c0_i32_0 = arith.constant 0 : i32
    %c0_i32_1 = arith.constant 0 : i32
    return %c0_i32, %c0_i32_0 : i32, i32
  }
  func.func @transform_3(%arg0: i32) -> (i32, i32) {
    %c0_i32 = arith.constant 0 : i32
    %c0_i32_0 = arith.constant 0 : i32
    %c0_i32_1 = arith.constant 0 : i32
    return %c0_i32, %c0_i32_0 : i32, i32
  }
  func.func @transform_4(%arg0: i32) -> (i32, i32, i32) {
    %c0_i32 = arith.constant 0 : i32
    %c0_i32_0 = arith.constant 0 : i32
    %c0_i32_1 = arith.constant 0 : i32
    return %arg0, %c0_i32, %c0_i32_0 : i32, i32, i32
  }
}

</mosaic_0001>

<bundles_post_ra>
// kernel: tpu_custom_call.1
= control target key start
LH: loop header
LB: loop body
LE: loop exit
PB: predicated region body
PF: predicated region fallthrough
CT: control target
= control target key end

     0   :  { %9 = vsyncpa [#allocation3], 0  ;;  %s748_s0 = inlined_call_operand.vmem [shape: bf16[2,8,16], index: 0, kind: input, shape index: {}]   ;;  %s749_s1 = inlined_call_operand.vmem [shape: bf16[8,8], index: 1, kind: input, shape index: {}]   ;;  %s750_s2 = inlined_call_operand.vmem [shape: f32[8,1], index: 2, kind: input, shape index: {}]   ;;  %s751_s3 = inlined_call_operand.vmem [shape: f32[8,1], index: 3, kind: input, shape index: {}]   ;;  %s752_s4 = inlined_call_operand.hbm [shape: f32[2,8,8], index: 4, kind: output, shape index: {}]  }
   0x1   :  { %11 = vsyncpa [#allocation3 + $0x1], 0  ;;  %s637_s15 = smov 0   ;;  %s639_s16 = smov 0  }
   0x2   :  { %s641_s17 = smov 0   ;;  %s643_s18 = smov 0  }
   0x3 LB: > { %s658_s19 = sadd.s32 4294967295, %s605_s18   ;;  %s457_s20 = sadd.s32 4294967294, %s605_s18   ;;  %s605_s18 = sphi %s643_s18, %s758_s18   ;;  %s601_s17 = sphi %s641_s17, %s757_s17   ;;  %s597_s16 = sphi %s639_s16, %s756_s16   ;;  %s593_s15 = sphi %s637_s15, %s755_s15  }
   0x4   : > { %s662_s21 = sadd.s32 1, %s605_s18   ;;  %s113_s22 = sadd.s32 1, %s601_s17 }
   0x5   : > { %s110_s23 = ssub.s32 %s605_s18, %s662_s21  ;;  %p123_p0 = scmp.ne.s32.totalorder %s601_s17, %s597_s16 }
   0x6   : > { %p111_p1 = scmp.eq.s32.totalorder %s110_s23, 0  ;;  %p124_p2 = scmp.eq.s32.totalorder %s658_s19, 1 }
   0x7   : > { %p129_p3 = scmp.ne.s32.totalorder %s597_s16, %s593_s15  ;;  %p130_p4 = scmp.eq.s32.totalorder %s457_s20, 1 }
   0x8   : > { %s673_s24 = scalar_select %p111_p1, %s601_s17, %s113_s22  }
   0x9   : > { %p675_p5 = por %p124_p2, %p123_p0  ;;  %p679_p6 = por %p130_p4, %p129_p3 }
   0xa   : > { %p460_p7 = scmp.ge.s32.totalorder %s605_s18, 1  ;;  %p164_p8 = scmp.lt.s32.totalorder %s605_s18, 3 }
   0xc   : > { %p165_p9 = pnand %p460_p7, %p164_p8 }
   0xd   : > { %p189_p10 = scmp.lt.s32.totalorder (!%p165_p9), %s658_s19, 1  ;;  %s186_s12 = sand.u32 (!%p165_p9), 1, %s597_s16  }
   0xe   : > { %168 = sbr.rel (%p165_p9) target bundleno = 915 (0x393), region = 36  ;;  %s461_s13 = sshll.u32 (!%p165_p9), %s186_s12, 3 }
   0xf   : > { %s467_s14 = sshll.u32 (!%p165_p9), %s658_s19, 7  ;;  %s188_s20 = scalar_lea.vmem (!%p165_p9), [#allocation2], %s461_s13 }
  0x10   : > { %s398_s22 = sshll.u32 (!%p165_p9), %s188_s20, 4  ;;  %s385_s29 = scalar_lea.sflag (!%p165_p9), [#allocation3], %s186_s12  ;;  %s399_s22 = int_to_ptr.vmem [resolvable:$true] %s398_s22 }
  0x11   : > { %s545_s30 = scalar_lea.vmem (!%p165_p9), %s399_s22, 128 }
  0x12   : > { %p546_p11 = scmp.ne.s32.totalorder (!%p165_p9), %s399_s22, %s545_s30 }
  0x13   : > { %s190_s27 = scalar_select %p189_p10, %s658_s19, 1  ;;  %vm197_vm0 = vcmask 130048   ;;  %v607_v5 = vmov 0   ;;  %v211_v14 = vld [vmem:[%s750_s2] sm:$0xff]  ;;  %v608_v20 = vmov 0.0   ;;  %vm609_vm1 = vmmov 0  }
  0x14   : > { %537 = vset.pattern.permute.xlu1 %v607_v5  ;;  %538 = vset.pattern.permute.xlu0 %v607_v5  ;;  %v215_v17 = vld [vmem:[%s751_s3] sm:$0xff]  ;;  %vm237_vm2 = vcmask 1043456   ;;  %vm233_vm3 = vcmask 64512   ;;  %v610_v40 = vmov 1065369472   ;;  %v378_v45 = vlaneseq  ;;  %p547_p12 = pnand %p546_p11, %p675_p5 }
  0x15   : > { %s462_s28 = sshll.u32 %s190_s27, 2  ;;  %476 = vmatprep.subr.bf16.mxu0 %v608_v20  ;;  %482 = vmatprep.subr.bf16.mxu1 %v608_v20  ;;  %v232_v28 = vld [vmem:[%s749_s1] sm:$0xf] }
  0x16   : > { %s192_s5 = scalar_lea.vmem %s748_s0, %s462_s28  ;;  %478 = vmatprep.mubr.msk.bf16.mxu0 %vm609_vm1, %v608_v20  ;;  %484 = vmatprep.mubr.msk.bf16.mxu1 %vm609_vm1, %v608_v20  ;;  %v379_v50 = vshrl.u32 %v378_v45, 7  ;;  %s396_s28 = scalar_lea.hbm %s752_s4, %s467_s14 }
  0x17   : > { %v690_v0 = vld [vmem:[%s192_s5] sm:$0xf]  ;;  %p548_p13 = pneg %p547_p12  ;;  %s611_s5 = smov [#allocation2]  }
  0x18   : > { %v196_v1 = vunpack.c.l.bf16 %v690_v0  ;;  %v380_v51 = vsub.s32 0, %v379_v50  ;;  %s549_s6 = sshll.u32 %s611_s5, 4  ;;  %s550_s6 = int_to_ptr.vmem [resolvable:$false] %s549_s6 }
  0x19   : > { %s551_s19 = scalar_lea.vmem %s550_s6, 256  ;;  %p552_p0 = scmp.lt.s32.totalorder %s399_s22, %s550_s6 }
  0x1a   : > { %v198_v2 = vsel %vm197_vm0, %v196_v1, 0.0  ;;  %v203_v3 = vmul.f32 %v196_v1, %v196_v1  ;;  %p553_p1 = scmp.lt.s32.totalorder %s551_s19, %s545_s30 }
  0x1b   : > { %199 = vadd.xlane.f32.xlu0 %v198_v2 }
  0x1c   : > { %v204_v4 = vsel %vm197_vm0, %v203_v3, 0.0  ;;  %p554_p2 = por %p553_p1, %p552_p0 }
  0x1e   : > { %p555_p3 = pnand %p554_p2, %p548_p13 }
  0x1f   : > { %205 = vadd.xlane.f32.xlu0 %v204_v4 }
  0xa4   : > { %v200_v6 = vpop.xlane.xlu0 %199 }
  0xa5   : > { %v202_v7 = vmul.f32 0.0625, %v200_v6 }
  0xa7   : > { %v208_v9 = vmul.f32 %v202_v7, %v202_v7 }
  0xa8   : > { %v206_v8 = vpop.xlane.xlu0 %205 }
  0xa9   : > { %v207_v10 = vmul.f32 0.0625, %v206_v8 }
  0xab   : > { %v209_v11 = vsub.f32 %v207_v10, %v208_v9 }
  0xad   : > { %v210_v12 = vmax.f32 %v209_v11, 0.0 }
  0xaf   : > { %v212_v13 = vadd.f32 0.001, %v210_v12 }
  0xb1   : > { %539 = vrsqrt.f32 %v212_v13 }
  0xbe   : > { %v540_v15 = vpop.eup %539 }
  0xbf   : > { %v214_v16 = vmul.f32 %v540_v15, %v211_v14 }
  0xc1   : > { %220 = vperm.xlu1 %537, %v214_v16   ;;  %v216_v18 = vmul.f32 %v214_v16, %v202_v7 }
  0xc3   : > { %v217_v19 = vsub.f32 %v215_v17, %v216_v18 }
  0xc5   : > { %226 = vperm.xlu1 %537, %v217_v19  }
 0x13c   : > { %v221_v21 = vpop.permute.xlu1 %220 }
 0x13d   : > { %v223_v22 = vmul.f32 %v221_v21, %v196_v1 }
 0x140   : > { %v227_v23 = vpop.permute.xlu1 %226 }
 0x141   : > { %v229_v24 = vadd.f32 %v227_v23, %v223_v22 }
 0x143   : > { %v230_v25 = vmax.f32 %v229_v24, 0.0 }
 0x145   : > { %v231_v26 = vpack.c.bf16 %v230_v25, %v230_v25 }
 0x147   : > { %v239_v27 = vsel %vm237_vm2, %v231_v26, 0 }
 0x148   : > { %477 = vmatpush3.bf16.msra.mxu0 %v239_v27 }
 0x149   : > { %488 = vmatprep.subr.bf16.mxu0 %v608_v20 }
 0x14b   : > { %479 = vmatmul.mubr.msk.bf16.vlgmr.msra.gmra.mxu0 %vm233_vm3, %v232_v28 }
 0x14c   : > { %490 = vmatprep.mubr.msk.bf16.mxu0 %vm609_vm1, %v608_v20 }
 0x20b   : > { %v275_v29 = vpop.f32.mrf.mxu0 }
 0x20c   : > { %v281_v30 = vsel %vm197_vm0, %v275_v29, -inf }
 0x20d   : > { %282 = vmax.xlane.f32.xlu0 %v281_v30  ;;  %v480_v31 = vpop.f32.mrf.mxu0 }
 0x20f   : > { %v278_v32 = vpop.f32.mrf.mxu0 }
 0x211   : > { %v481_v33 = vpop.f32.mrf.mxu0 }
 0x296   : > { %v283_v34 = vpop.xlane.xlu0 %282 }
 0x297   : > { %v284_v35 = vsub.f32 %v275_v29, %v283_v34 }
 0x299   : > { %v285_v36 = vmul.f32 1.442695, %v284_v35 }
 0x29b   : > { %541 = vpow2.f32 %v285_v36 }
 0x2a8   : > { %v542_v37 = vpop.eup %541 }
 0x2a9   : > { %v287_v38 = vpack.c.bf16 %v542_v37, %v542_v37 }
 0x2ab   : > { %v292_v39 = vsel %vm197_vm0, %v287_v38, 0 }
 0x2ac   : > { %483 = vmatpush3.bf16.xpose.msra.mxu1 %v292_v39  ;;  %489 = vmatpush3.bf16.xpose.msra.mxu0 %v292_v39 }
 0x2b3   : > { %491 = vmatmul.mubr.msk.bf16.vlgmr.msra.gmra.mxu0 %vm197_vm0, %v610_v40  ;;  %485 = vmatmul.mubr.msk.bf16.vlgmr.msra.gmra.mxu1 %vm197_vm0, %v690_v0 }
 0x373   : > { %v371_v41 = vpop.f32.mrf.mxu0  ;;  %v328_v42 = vpop.f32.mrf.mxu1 }
 0x374   : > { %543 = vrcp.f32 %v371_v41 }
 0x375   : > { %v492_v43 = vpop.f32.mrf.mxu0  ;;  %v486_v44 = vpop.f32.mrf.mxu1 }
 0x377   : > { %v374_v46 = vpop.f32.mrf.mxu0  ;;  %v331_v47 = vpop.f32.mrf.mxu1 }
 0x379   : > { %v493_v48 = vpop.f32.mrf.mxu0  ;;  %v487_v49 = vpop.f32.mrf.mxu1 }
 0x381   : > { %v544_v52 = vpop.eup %543 }
 0x382   : > { %v381_v53 = vrot.slane %v544_v52, %v380_v51 }
 0x384   : > { %v382_v54 = vmul.f32 %v381_v53, %v328_v42 }
 0x386   : > { %383 = vst.msk [vmem:[%s188_s20] sm:$0xff] %vm233_vm3, %v382_v54 }
 0x387   : > { %558 = shalt.err (!%p555_p3)
}
 0x388   : > { %s559_s7 = scalar_lea.hbm %s396_s28, 128  ;;  %s563_s10 = scalar_lea.hbm %s752_s4, 256 }
 0x389   : > { %p560_p4 = scmp.ne.s32.totalorder %s396_s28, %s559_s7  ;;  %p564_p9 = scmp.lt.s32.totalorder %s396_s28, %s752_s4 }
 0x38a   : > { %p565_p10 = scmp.lt.s32.totalorder %s563_s10, %s559_s7 }
 0x38b   : > { %p561_p7 = pnand %p560_p4, %p675_p5 }
 0x38c   : > { %p566_p11 = por %p565_p10, %p564_p9 }
 0x38d   : > { %p562_p8 = pneg %p561_p7 }
 0x38f   : > { %p567_p12 = pnand %p566_p11, %p562_p8 }
 0x391   : > { %570 = shalt.err (!%p567_p12)
}
 0x392   : > { %494 = dma.vmem_to_hbm [thread:$0]  (%p675_p5), %s399_s22, 128, %s396_s28, %s385_s29  }
 0x393 PF: > { %p500_p13 = scmp.ge.s32.totalorder %s605_s18, 2  ;;  %s410_s13 = sand.u32 1, %s593_s15  }
 0x394   : > { %s411_s14 = scalar_lea.sflag [#allocation3], %s410_s13 }
 0x395   : > { %p497_p0 = pnand %p500_p13, %p679_p6 }
 0x397   : > { %p498_p1 = pneg %p497_p0 }
 0x399   : > { %588 = dma.done.wait (%p498_p1), %s411_s14, 128  }
 0x39a   : > { %590 = vsyncadd (%p498_p1), %s411_s14, 4294967168  ;;  %p14_p2 = scmp.ge.s32.totalorder %s662_s21, 4   ;;  %s755_s15 = smov %s597_s16 }
 0x39b   : > { %s756_s16 = smov %s601_s17  ;;  %s757_s17 = smov %s673_s24 }
 0x39c   : > { %s758_s18 = smov %s662_s21  ;;  %16 = sbr.rel (!%p14_p2) target bundleno = 3 (0x3), region = 71 }
 0x3a1   :  { %416 = vsyncpa [#allocation3], 1 }
 0x3a2   :  { %418 = vsyncpa [#allocation3 + $0x1], 1 }

</bundles_post_ra>
